<compile_context>
chip_gen: v6e
topology: v6e:2x2x1
jax: 0.10.0
libtpu: 0.0.40
codegen_flags: <defaults>
</compile_context>

<pallas_src>
import jax
import jax.numpy as jnp
from jax.experimental import pallas as pl
from jax.experimental.pallas import tpu as pltpu


def lem_kernel(v_cat_ref, logl_cat_ref, vt_cat_ref, out_ref):
    # V @ diag(logL) == V * logL[None, :]  (per-lane scaling, VPU), then a
    # single MXU matmul yields (source_log - target_log) directly because
    # logl_cat already carries [log L_s | -log L_t].
    a = v_cat_ref[...] * logl_cat_ref[...]                   # [N, 2N]   VPU
    diff = jnp.dot(a, vt_cat_ref[...],
                   preferred_element_type=jnp.float32)       # [N, N]    MXU
    # squared Frobenius norm (VPU mul + XLU cross-lane reduce -> scalar to SMEM)
    out_ref[0, 0] = jnp.sum(diff * diff)


def lem_pallas(source, target):
    """Squared Frobenius distance between the matrix logs of `source`/`target`."""
    n = source.shape[0]
    assert source.shape == (n, n) and target.shape == (n, n)

    # TODO(synk): torch.linalg.eig (general, complex) has no TPU/Pallas
    # equivalent; LEM inputs are SPD so eigh gives identical real results,
    # and the orthogonal V lets us replace inv(V) with V.T.
    stacked = jnp.stack([source, target]).astype(jnp.float32)   # (2, N, N)
    L, V = jnp.linalg.eigh(stacked)                              # one batched eigh
    logL = jnp.log(L)                                            # (2, N); -inf/NaN if not strictly SPD (same as ref)
    vs, vt = V[0], V[1]
    logls, loglt = logL[0], logL[1]

    # Layout plumbing (cheap, lives next to eigh in XLA): fuse both
    # reconstructions + subtraction into one [N, 2N] @ [2N, N] matmul.
    v_cat    = jnp.concatenate([vs, vt], axis=1)                    # [N, 2N]
    logl_cat = jnp.concatenate([logls, -loglt]).reshape(1, 2 * n)   # [1, 2N]
    vt_cat   = jnp.concatenate([vs.T, vt.T], axis=0)                # [2N, N] (pre-transposed)

    out = pl.pallas_call(
        lem_kernel,
        out_shape=jax.ShapeDtypeStruct((1, 1), jnp.float32),
        in_specs=[pl.BlockSpec(memory_space=pltpu.MemorySpace.VMEM),
                  pl.BlockSpec(memory_space=pltpu.MemorySpace.VMEM),
                  pl.BlockSpec(memory_space=pltpu.MemorySpace.VMEM)],
        out_specs=pl.BlockSpec(memory_space=pltpu.MemorySpace.SMEM),
    )(v_cat, logl_cat, vt_cat)

    return out[0, 0]


def lem_reference(source, target):
    """Plain-JAX reference mirroring the PyTorch module (SPD inputs)."""
    def mat_log(m):
        L, V = jnp.linalg.eigh(m.astype(jnp.float32))
        return (V * jnp.log(L)[None, :]) @ jnp.linalg.inv(V)
    d = mat_log(source) - mat_log(target)
    return jnp.sum(d * d)


def _make_spd(key, n):
    r = jax.random.normal(key, (n, n), dtype=jnp.float32)
    return r @ r.T + n * jnp.eye(n, dtype=jnp.float32)


if __name__ == "__main__":
    N = 32
    k0, k1 = jax.random.split(jax.random.PRNGKey(0))
    source = _make_spd(k0, N)   # strictly SPD, as required for a real matrix log
    target = _make_spd(k1, N)

    x = jax.block_until_ready(lem_pallas(source, target))
    x_ref = jax.block_until_ready(lem_reference(source, target))

    assert jnp.isfinite(x), "non-finite LEM result"
    assert jnp.allclose(x, x_ref, rtol=1e-4, atol=1e-4), (x, x_ref)
    print("KERNEL_OK")
</pallas_src>

<mosaic_0001>
module attributes {stable_mosaic.version = 11 : i64} {
  func.func @lem_kernel(%arg0: memref<32x64xf32, #tpu.memory_space<vmem>>, %arg1: memref<1x64xf32, #tpu.memory_space<vmem>>, %arg2: memref<64x32xf32, #tpu.memory_space<vmem>>, %arg3: memref<1x1xf32, #tpu.memory_space<smem>>) attributes {dimension_semantics = [], scalar_prefetch = 0 : i64, scratch_operands = 0 : i64, tpu.core_type = #tpu.core_type<tc>} {
    %c0 = arith.constant 0 : index
    %c0_0 = arith.constant 0 : index
    %0 = vector.load %arg0[%c0, %c0_0] : memref<32x64xf32, #tpu.memory_space<vmem>>, vector<32x64xf32>
    %c0_1 = arith.constant 0 : index
    %c0_2 = arith.constant 0 : index
    %1 = vector.load %arg1[%c0_1, %c0_2] : memref<1x64xf32, #tpu.memory_space<vmem>>, vector<1x64xf32>
    %2 = vector.broadcast %1 : vector<1x64xf32> to vector<32x64xf32>
    %3 = arith.mulf %0, %2 : vector<32x64xf32>
    %c0_3 = arith.constant 0 : index
    %c0_4 = arith.constant 0 : index
    %4 = vector.load %arg2[%c0_3, %c0_4] : memref<64x32xf32, #tpu.memory_space<vmem>>, vector<64x32xf32>
    %cst = arith.constant dense<0.000000e+00> : vector<32x32xf32>
    %5 = tpu.matmul %3, %4, %cst {dimension_numbers = #tpu.dot_dimension_numbers<[1], [0], [0], [1], [0, 0, 1, 1], [], []>} : vector<32x64xf32>, vector<64x32xf32>, vector<32x32xf32> -> vector<32x32xf32>
    %6 = arith.mulf %5, %5 : vector<32x32xf32>
    %7 = vector.shape_cast %6 : vector<32x32xf32> to vector<1x32x32xf32>
    %cst_5 = arith.constant dense<0.000000e+00> : vector<1xf32>
    %8 = vector.multi_reduction <add>, %7, %cst_5 [1, 2] : vector<1x32x32xf32> to vector<1xf32>
    %9 = vector.shape_cast %8 : vector<1xf32> to vector<1x1x1xf32>
    %10 = vector.extract %9[0, 0, 0] : f32 from vector<1x1x1xf32>
    %c0_6 = arith.constant 0 : index
    %c0_7 = arith.constant 0 : index
    %11 = memref.load %arg3[%c0_6, %c0_7] : memref<1x1xf32, #tpu.memory_space<smem>>
    memref.store %10, %arg3[%c0_6, %c0_7] : memref<1x1xf32, #tpu.memory_space<smem>>
    return
  }
}

</mosaic_0001>

<bundles_post_ra>
// kernel: tpu_custom_call.1
= control target key start
LH: loop header
LB: loop body
LE: loop exit
PB: predicated region body
PF: predicated region fallthrough
CT: control target
= control target key end

     0   :  { %s303_s0 = inlined_call_operand.vmem [shape: f32[32,64], index: 0, kind: input, shape index: {}]   ;;  %s304_s1 = inlined_call_operand.vmem [shape: f32[1,64], index: 1, kind: input, shape index: {}]   ;;  %s305_s2 = inlined_call_operand.vmem [shape: f32[64,32], index: 2, kind: input, shape index: {}]   ;;  %s306_s3 = inlined_call_operand.hbm [shape: f32[1,1], index: 3, kind: output, shape index: {}]  }
   0x1   :  { %v37_v0 = vld [vmem:[%s305_s2 + $0x38] sm:$0xff]  ;;  %v36_v1 = vld [vmem:[%s305_s2 + $0x30] sm:$0xff]  ;;  %v35_v2 = vld [vmem:[%s305_s2 + $0x28] sm:$0xff] }
   0x2   :  { %189 = vmatprep.subr.mxu0 %v37_v0  ;;  %211 = vmatprep.subr.mxu1 %v37_v0  ;;  %v34_v3 = vld [vmem:[%s305_s2 + $0x20] sm:$0xff] }
   0x3   :  { %190 = vmatpush3.msra.mxu0 %v37_v0  ;;  %219 = vmatpush3.msra.mxu1 %v37_v0 }
   0x4   :  { %191 = vmatprep.subr.mxu0 %v36_v1  ;;  %212 = vmatprep.subr.mxu1 %v36_v1 }
   0x5   :  { %192 = vmatpush3.msra.mxu0 %v36_v1  ;;  %220 = vmatpush3.msra.mxu1 %v36_v1 }
   0x6   :  { %8 = vsyncpa [#allocation3], 0  ;;  %193 = vmatprep.subr.mxu0 %v35_v2  ;;  %213 = vmatprep.subr.mxu1 %v35_v2  ;;  %v33_v4 = vld [vmem:[%s305_s2 + $0x18] sm:$0xff]  ;;  %v32_v5 = vld [vmem:[%s305_s2 + $0x10] sm:$0xff]  ;;  %vm38_vm0 = vcmask 523264   ;;  %vm140_vm1 = vcmask 261120  }
   0x7   :  { %194 = vmatpush3.msra.mxu0 %v35_v2  ;;  %221 = vmatpush3.msra.mxu1 %v35_v2  ;;  %v31_v6 = vld [vmem:[%s305_s2 + $0x8] sm:$0xff]  ;;  %v15_v7 = vld [vmem:[%s303_s0] sm:$0xff]  ;;  %v17_v9 = vld [vmem:[%s303_s0 + $0x10] sm:$0xff] }
   0x8   :  { %195 = vmatprep.subr.mxu0 %v34_v3  ;;  %214 = vmatprep.subr.mxu1 %v34_v3  ;;  %v172_v8 = vld [vmem:[%s304_s1] ss:$0 sm:$0xff]  ;;  %v16_v10 = vld [vmem:[%s303_s0 + $0x8] sm:$0xff]  ;;  %v18_v11 = vld [vmem:[%s303_s0 + $0x18] sm:$0xff]  ;;  %s240_s1 = smov [#allocation2]  }
   0x9   :  { %196 = vmatpush3.msra.mxu0 %v34_v3  ;;  %222 = vmatpush3.msra.mxu1 %v34_v3  ;;  %v30_v12 = vld [vmem:[%s305_s2] sm:$0xff]  ;;  %v26_v13 = vmul.f32 %v172_v8, %v15_v7  ;;  %v28_v14 = vmul.f32 %v172_v8, %v17_v9  ;;  %v27_v15 = vmul.f32 %v172_v8, %v16_v10 }
   0xa   :  { %197 = vmatprep.subr.mxu0 %v33_v4  ;;  %215 = vmatprep.subr.mxu1 %v33_v4  ;;  %v29_v16 = vmul.f32 %v172_v8, %v18_v11 }
   0xb   :  { %198 = vmatpush3.msra.mxu0 %v33_v4  ;;  %223 = vmatpush3.msra.mxu1 %v33_v4 }
   0xc   :  { %199 = vmatprep.subr.mxu0 %v32_v5  ;;  %216 = vmatprep.subr.mxu1 %v32_v5 }
   0xd   :  { %200 = vmatpush3.msra.mxu0 %v32_v5  ;;  %224 = vmatpush3.msra.mxu1 %v32_v5 }
   0xe   :  { %201 = vmatprep.subr.mxu0 %v31_v6  ;;  %217 = vmatprep.subr.mxu1 %v31_v6 }
   0xf   :  { %202 = vmatpush3.msra.mxu0 %v31_v6  ;;  %225 = vmatpush3.msra.mxu1 %v31_v6 }
  0x10   :  { %203 = vmatprep.subr.mxu0 %v30_v12  ;;  %218 = vmatprep.subr.mxu1 %v30_v12 }
  0x11   :  { %204 = vmatpush3.msra.mxu0 %v30_v12  ;;  %226 = vmatpush3.msra.mxu1 %v30_v12 }
  0x12   :  { %205 = vmatprep.mubr.msk.f32.mxu0 %vm38_vm0, %v26_v13  ;;  %208 = vmatprep.mubr.msk.f32.mxu1 %vm38_vm0, %v28_v14 }
  0x13   :  { %206 = vmatmul.mubr.msk.f32.vlgmr.msra.gmra.mxu0 %vm38_vm0, %v27_v15  ;;  %209 = vmatmul.mubr.msk.f32.vlgmr.msra.gmra.mxu1 %vm38_vm0, %v29_v16 }
  0xd3   :  { %v207_v17 = vpop.f32.mrf.mxu0  ;;  %v210_v18 = vpop.f32.mrf.mxu1 }
  0xd4   :  { %v137_v19 = vmul.f32 %v207_v17, %v207_v17  ;;  %v139_v25 = vmul.f32 %v210_v18, %v210_v18 }
  0xd5   :  { %v117_v20 = vpop.f32.mrf.mxu0  ;;  %v127_v21 = vpop.f32.mrf.mxu1 }
  0xd6   :  { %v136_v22 = vmul.f32 %v117_v20, %v117_v20  ;;  %v138_v23 = vmul.f32 %v127_v21, %v127_v21  ;;  %v142_v24 = vsel %vm140_vm1, %v137_v19, 0.0  ;;  %v146_v30 = vsel %vm140_vm1, %v139_v25, 0.0 }
  0xd8   :  { %v141_v26 = vsel %vm140_vm1, %v136_v22, 0.0  ;;  %v144_v28 = vsel %vm140_vm1, %v138_v23, 0.0 }
  0xd9   :  { %v143_v27 = vadd.f32 %v142_v24, %v141_v26 }
  0xdb   :  { %v145_v29 = vadd.f32 %v144_v28, %v143_v27 }
  0xdd   :  { %v147_v31 = vadd.f32 %v146_v30, %v145_v29 }
  0xdf   :  { %148 = vadd.xlane.f32.xlu0 %v147_v31 }
 0x168   :  { %v149_v32 = vpop.xlane.xlu0 %148 }
 0x169   :  { %v150_v33 = vrot.slane %v149_v32, 4 }
 0x16b   :  { %v151_v34 = vadd.f32 %v150_v33, %v149_v32 }
 0x16d   :  { %v152_v35 = vrot.slane %v151_v34, 2 }
 0x16f   :  { %v153_v36 = vadd.f32 %v152_v35, %v151_v34 }
 0x171   :  { %v154_v37 = vrot.slane %v153_v36, 1 }
 0x173   :  { %v155_v38 = vadd.f32 %v154_v37, %v153_v36 }
 0x175   :  { %227 = vpush %v155_v38 }
 0x1a6   :  { %s228_s0 = spop %227 }
 0x1a7   :  { %158 = sst [smem:[#allocation2]] %s228_s0 }
 0x1a8   :  { %166 = dma.smem_to_hbm %s240_s1, 16, %s306_s3, [#allocation3]  }
 0x1a9   :  { %238 = dma.done.wait [#allocation3], 16  }
 0x1aa   :  { %239 = vsyncadd [#allocation3], 4294967280 }
 0x1ab   :  { %170 = sfence }
 0x1ac   :  { %171 = vsyncpa [#allocation3], 1 }

</bundles_post_ra>
